<compile_context>
chip_gen: v7x
topology: tpu7x:2x2x1
jax: 0.10.0
libtpu: 0.0.40
codegen_flags: <defaults>
</compile_context>

<pallas_src>
import jax
import jax.numpy as jnp
from jax.experimental import pallas as pl
from jax.experimental.pallas import tpu as pltpu


def _round_up(v: int, m: int) -> int:
    return (v + m - 1) // m * m


# ---------------------------------------------------------------------------
# Kernels
# ---------------------------------------------------------------------------
def _h_kernel(x_ref, sv_ref, out_ref):
    # x_ref  : VMEM (TB, 8)       state vectors (zero-padded rows)
    # sv_ref : VMEM (3, TB, N)    satellite coords, coordinate-major, lane = satellite
    # out_ref: VMEM (TB, N)       predicted pseudoranges (lane-dense)
    px = x_ref[:, 0:1]
    py = x_ref[:, 2:3]
    pz = x_ref[:, 4:5]
    clk = x_ref[:, 6:7]
    dx = px - sv_ref[0]
    dy = py - sv_ref[1]
    dz = pz - sv_ref[2]
    # TODO(synk): TPU is f32-only; with real ECEF magnitudes (~2.6e7 m) the sqrt keeps
    # ~7 significant digits (metre-level rounding). Subtract a reference position
    # upstream if that matters for the EKF.
    out_ref[...] = jnp.sqrt(dx * dx + dy * dy + dz * dz) + clk


def _make_h_mlp_kernel(d: int):
    """Trainable path: range + 3-layer MLP, entirely on the VPU (no MXU)."""

    def kernel(x_ref, sv_ref, p_ref, out_ref):
        # p_ref rows: w1[0:8], w2[8:8+d], w3[8+d:8+2d], b1/b2/b3 at rows 8+2d .. 8+2d+2.
        # Columns of p_ref are zero-padded d -> N, so padded output lanes stay exactly 0.
        px = x_ref[:, 0:1]
        py = x_ref[:, 2:3]
        pz = x_ref[:, 4:5]
        clk = x_ref[:, 6:7]
        dx = px - sv_ref[0]
        dy = py - sv_ref[1]
        dz = pz - sv_ref[2]
        rng = jnp.sqrt(dx * dx + dy * dy + dz * dz) + clk          # (TB, N)

        b1 = p_ref[8 + 2 * d + 0: 8 + 2 * d + 1, :]                # (1, N)
        b2 = p_ref[8 + 2 * d + 1: 8 + 2 * d + 2, :]
        b3 = p_ref[8 + 2 * d + 2: 8 + 2 * d + 3, :]

        # Layer 1: (TB,8) @ (8,d) as 8 unrolled broadcast-MACs on the VPU.
        acc = x_ref[:, 0:1] * p_ref[0:1, :]
        for k in range(1, 8):
            acc = acc + x_ref[:, k:k + 1] * p_ref[k:k + 1, :]
        h1 = jnp.maximum(acc + b1, 0.0)                            # (TB, N)

        # Layer 2: (TB,d) @ (d,d)
        acc = h1[:, 0:1] * p_ref[8:9, :]
        for j in range(1, d):
            acc = acc + h1[:, j:j + 1] * p_ref[8 + j: 8 + j + 1, :]
        h2 = jnp.maximum(acc + b2, 0.0)

        # Layer 3: (TB,d) @ (d,d)
        acc = h2[:, 0:1] * p_ref[8 + d: 8 + d + 1, :]
        for j in range(1, d):
            acc = acc + h2[:, j:j + 1] * p_ref[8 + d + j: 8 + d + j + 1, :]
        h3 = acc + b3                                              # (TB, N), pad lanes = 0

        out_ref[...] = rng + h3

    return kernel


# ---------------------------------------------------------------------------
# Module wrapper
# ---------------------------------------------------------------------------
class ObservationModel:
    """JAX/Pallas port of the PyTorch ObservationModel.

    Accepts either the original single-step signature (x: (8,), sv_pos: (n, 3))
    or a batched stack (x: (B, 8), sv_pos: (B, n, 3)); the batched form runs a
    single gridded pallas_call.
    """

    def __init__(self, trainable: bool = False, dim_measurement: int = 8,
                 key=jax.random.PRNGKey(42)):
        self.trainable = trainable
        self.dim_measurement = int(dim_measurement)
        self._cache = {}

        if trainable:
            d = self.dim_measurement
            n_lanes = _round_up(d, 128)
            ks = jax.random.split(key, 3)

            def kaiming(k, fan_in, fan_out):
                # kaiming_normal_ (fan_in mode, gain sqrt(2)) then * 1e-30, like the torch init.
                w = jax.random.normal(k, (fan_in, fan_out), jnp.float32)
                return w * jnp.sqrt(2.0 / fan_in) * 1e-30

            self.w1 = kaiming(ks[0], 8, d)
            self.w2 = kaiming(ks[1], d, d)
            self.w3 = kaiming(ks[2], d, d)
            # torch biases: zero_() then *1e-30 -> exactly zero
            self.b1 = jnp.zeros((d,), jnp.float32)
            self.b2 = jnp.zeros((d,), jnp.float32)
            self.b3 = jnp.zeros((d,), jnp.float32)

            # Single coalesced, lane-padded parameter buffer: (8 + 2d + 3, N_lanes)
            params = jnp.zeros((8 + 2 * d + 3, n_lanes), jnp.float32)
            params = params.at[0:8, 0:d].set(self.w1)
            params = params.at[8:8 + d, 0:d].set(self.w2)
            params = params.at[8 + d:8 + 2 * d, 0:d].set(self.w3)
            # bias rows stay zero
            self._params = params

    # -- one jitted, gridded pallas_call per (B, n) shape ----------------------
    def _get_fn(self, B: int, n: int):
        cache_key = (B, n)
        fn = self._cache.get(cache_key)
        if fn is not None:
            return fn

        d = self.dim_measurement
        N = _round_up(n, 128)                     # lane-dense satellite axis
        TB = min(_round_up(B, 8), 128)            # batch rows per block (sublane axis)
        B_pad = _round_up(B, TB)
        grid = (B_pad // TB,)

        in_specs = [
            pl.BlockSpec((TB, 8), lambda i: (i, 0)),        # states
            pl.BlockSpec((3, TB, N), lambda i: (0, i, 0)),  # satellite coords
        ]
        if self.trainable:
            n_rows = 8 + 2 * d + 3
            # constant index_map -> params DMA'd once, VMEM-resident across the grid
            in_specs.append(pl.BlockSpec((n_rows, N), lambda i: (0, 0)))
            kernel = _make_h_mlp_kernel(d)
        else:
            kernel = _h_kernel

        call = pl.pallas_call(
            kernel,
            out_shape=jax.ShapeDtypeStruct((B_pad, N), jnp.float32),
            grid_spec=pltpu.PrefetchScalarGridSpec(
                num_scalar_prefetch=0,
                grid=grid,
                in_specs=in_specs,
                out_specs=pl.BlockSpec((TB, N), lambda i: (i, 0)),
            ),
            compiler_params=pltpu.CompilerParams(
                dimension_semantics=("parallel",),   # v7x: shard batch across both TCs
            ),
        )

        def fwd(x, sv_pos, *params):
            # Layout prep fuses into one XLA fusion under jit (no standalone transpose launch).
            xp = jnp.zeros((B_pad, 8), jnp.float32).at[:B, :].set(x)
            svp = jnp.zeros((B_pad, N, 3), jnp.float32).at[:B, :n, :].set(sv_pos)
            sv_t = jnp.transpose(svp, (2, 0, 1))              # (3, B_pad, N), lane = satellite
            out = call(xp, sv_t, *params)                     # (B_pad, N)
            return out[:B, :n]

        fn = jax.jit(fwd)
        self._cache[cache_key] = fn
        return fn

    def __call__(self, x, sv_pos):
        x = jnp.asarray(x, jnp.float32)
        sv_pos = jnp.asarray(sv_pos, jnp.float32)
        single = (x.ndim == 1)
        if single:
            x = x[None, :]
            sv_pos = sv_pos[None, :, :]
        B, n = x.shape[0], sv_pos.shape[1]
        if self.trainable and n != self.dim_measurement:
            raise ValueError(
                f"trainable ObservationModel requires n (= {n}) == dim_measurement "
                f"(= {self.dim_measurement}) for the h(x) + W(x) broadcast")
        fn = self._get_fn(B, n)
        args = (x, sv_pos, self._params) if self.trainable else (x, sv_pos)
        out = fn(*args)
        return out[0] if single else out


# ---------------------------------------------------------------------------
# Pure-JAX reference (numerical sanity check)
# ---------------------------------------------------------------------------
def _reference(model: ObservationModel, x, sv_pos):
    x = jnp.asarray(x, jnp.float32)
    sv_pos = jnp.asarray(sv_pos, jnp.float32)
    if x.ndim == 1:
        x = x[None, :]
        sv_pos = sv_pos[None, :, :]
    pos = x[:, jnp.array([0, 2, 4])]                               # (B, 3)
    rng = jnp.linalg.norm(pos[:, None, :] - sv_pos, axis=-1) + x[:, 6:7]
    if not model.trainable:
        return rng
    v = jnp.maximum(x @ model.w1 + model.b1, 0.0)
    v = jnp.maximum(v @ model.w2 + model.b2, 0.0)
    v = v @ model.w3 + model.b3
    return rng + v


# ---------------------------------------------------------------------------
if __name__ == "__main__":
    key = jax.random.PRNGKey(0)
    kx, ks, kx2, ks2 = jax.random.split(key, 4)

    # ---- batched, non-trainable --------------------------------------------
    B, n = 16, 8                                                   # 16 EKF steps, 8 satellites
    x = jax.random.normal(kx, (B, 8), jnp.float32) * 100.0
    sv_pos = jax.random.normal(ks, (B, n, 3), jnp.float32) * 1000.0

    m0 = ObservationModel(trainable=False)
    y0 = jax.block_until_ready(m0(x, sv_pos))
    r0 = _reference(m0, x, sv_pos)
    assert y0.shape == (B, n)
    assert jnp.allclose(y0, r0, rtol=1e-5, atol=1e-3), float(jnp.abs(y0 - r0).max())

    # ---- original single-step signature still works -------------------------
    y0s = jax.block_until_ready(m0(x[0], sv_pos[0]))
    assert y0s.shape == (n,)
    assert jnp.allclose(y0s, r0[0], rtol=1e-5, atol=1e-3)

    # ---- multi-block grid (grid=(2,)) with padded satellite count -----------
    B2, n2 = 200, 12
    x2 = jax.random.normal(kx2, (B2, 8), jnp.float32) * 100.0
    sv2 = jax.random.normal(ks2, (B2, n2, 3), jnp.float32) * 1000.0
    y2 = jax.block_until_ready(m0(x2, sv2))
    r2 = _reference(m0, x2, sv2)
    assert y2.shape == (B2, n2)
    assert jnp.allclose(y2, r2, rtol=1e-5, atol=1e-3), float(jnp.abs(y2 - r2).max())

    # ---- batched, trainable (h + near-zero MLP on the VPU) ------------------
    m1 = ObservationModel(trainable=True, dim_measurement=n)
    y1 = jax.block_until_ready(m1(x, sv_pos))
    r1 = _reference(m1, x, sv_pos)
    assert y1.shape == (B, n)
    assert jnp.allclose(y1, r1, rtol=1e-5, atol=1e-3), float(jnp.abs(y1 - r1).max())

    print("KERNEL_OK")
</pallas_src>

<mosaic_0001>
module attributes {stable_mosaic.version = 11 : i64} {
  func.func @_h_kernel(%arg0: i32, %arg1: memref<16x8xf32, #tpu.memory_space<vmem>>, %arg2: memref<3x16x128xf32, #tpu.memory_space<vmem>>, %arg3: memref<16x128xf32, #tpu.memory_space<vmem>>) attributes {dimension_semantics = [#tpu.dimension_semantics<parallel>], iteration_bounds = array<i64: 1>, scalar_prefetch = 0 : i64, scratch_operands = 0 : i64, tpu.core_type = #tpu.core_type<tc>, window_params = [{transform_indices = @transform_0, window_bounds = array<i64: 16, 8>}, {transform_indices = @transform_1, window_bounds = array<i64: 3, 16, 128>}, {transform_indices = @transform_2, window_bounds = array<i64: 16, 128>}]} {
    %c0 = arith.constant 0 : index
    %c0_0 = arith.constant 0 : index
    %0 = vector.load %arg1[%c0, %c0_0] : memref<16x8xf32, #tpu.memory_space<vmem>>, vector<16x1xf32>
    %c0_1 = arith.constant 0 : index
    %c2 = arith.constant 2 : index
    %1 = vector.load %arg1[%c0_1, %c2] : memref<16x8xf32, #tpu.memory_space<vmem>>, vector<16x1xf32>
    %c0_2 = arith.constant 0 : index
    %c4 = arith.constant 4 : index
    %2 = vector.load %arg1[%c0_2, %c4] : memref<16x8xf32, #tpu.memory_space<vmem>>, vector<16x1xf32>
    %c0_3 = arith.constant 0 : index
    %c6 = arith.constant 6 : index
    %3 = vector.load %arg1[%c0_3, %c6] : memref<16x8xf32, #tpu.memory_space<vmem>>, vector<16x1xf32>
    %c0_4 = arith.constant 0 : index
    %c0_5 = arith.constant 0 : index
    %c0_6 = arith.constant 0 : index
    %4 = vector.load %arg2[%c0_4, %c0_5, %c0_6] : memref<3x16x128xf32, #tpu.memory_space<vmem>>, vector<1x16x128xf32>
    %5 = vector.shape_cast %4 : vector<1x16x128xf32> to vector<16x128xf32>
    %6 = vector.broadcast %0 : vector<16x1xf32> to vector<16x128xf32>
    %7 = arith.subf %6, %5 : vector<16x128xf32>
    %c1 = arith.constant 1 : index
    %c0_7 = arith.constant 0 : index
    %c0_8 = arith.constant 0 : index
    %8 = vector.load %arg2[%c1, %c0_7, %c0_8] : memref<3x16x128xf32, #tpu.memory_space<vmem>>, vector<1x16x128xf32>
    %9 = vector.shape_cast %8 : vector<1x16x128xf32> to vector<16x128xf32>
    %10 = vector.broadcast %1 : vector<16x1xf32> to vector<16x128xf32>
    %11 = arith.subf %10, %9 : vector<16x128xf32>
    %c2_9 = arith.constant 2 : index
    %c0_10 = arith.constant 0 : index
    %c0_11 = arith.constant 0 : index
    %12 = vector.load %arg2[%c2_9, %c0_10, %c0_11] : memref<3x16x128xf32, #tpu.memory_space<vmem>>, vector<1x16x128xf32>
    %13 = vector.shape_cast %12 : vector<1x16x128xf32> to vector<16x128xf32>
    %14 = vector.broadcast %2 : vector<16x1xf32> to vector<16x128xf32>
    %15 = arith.subf %14, %13 : vector<16x128xf32>
    %16 = arith.mulf %7, %7 : vector<16x128xf32>
    %17 = arith.mulf %11, %11 : vector<16x128xf32>
    %18 = arith.addf %16, %17 : vector<16x128xf32>
    %19 = arith.mulf %15, %15 : vector<16x128xf32>
    %20 = arith.addf %18, %19 : vector<16x128xf32>
    %21 = math.sqrt %20 : vector<16x128xf32>
    %22 = vector.broadcast %3 : vector<16x1xf32> to vector<16x128xf32>
    %23 = arith.addf %21, %22 : vector<16x128xf32>
    %c0_12 = arith.constant 0 : index
    %c0_13 = arith.constant 0 : index
    %24 = vector.load %arg3[%c0_12, %c0_13] : memref<16x128xf32, #tpu.memory_space<vmem>>, vector<16x128xf32>
    tpu.vector_store %arg3[%c0_12, %c0_13], %23 {strides = array<i32>} : memref<16x128xf32, #tpu.memory_space<vmem>>, vector<16x128xf32>,
    return
  }
  func.func @transform_0(%arg0: i32) -> (i32, i32) {
    %c0_i32 = arith.constant 0 : i32
    %c0_i32_0 = arith.constant 0 : i32
    return %arg0, %c0_i32 : i32, i32
  }
  func.func @transform_1(%arg0: i32) -> (i32, i32, i32) {
    %c0_i32 = arith.constant 0 : i32
    %c0_i32_0 = arith.constant 0 : i32
    %c0_i32_1 = arith.constant 0 : i32
    return %c0_i32, %arg0, %c0_i32_0 : i32, i32, i32
  }
  func.func @transform_2(%arg0: i32) -> (i32, i32) {
    %c0_i32 = arith.constant 0 : i32
    %c0_i32_0 = arith.constant 0 : i32
    return %arg0, %c0_i32 : i32, i32
  }
}

</mosaic_0001>

<bundles_post_ra>
// kernel: fwd.1
= control target key start
LH: loop header
LB: loop body
LE: loop exit
PB: predicated region body
PF: predicated region fallthrough
CT: control target
= control target key end

     0   :  { %v111_v0 = vmov 2   ;;  %v112_v1 = vmov 0   ;;  %v113_v4 = vmov 4   ;;  %v114_v5 = vmov 6   ;;  %s160_s0 = inlined_call_operand.vmem [shape: f32[16,8], index: 0, kind: input, shape index: {}]   ;;  %s161_s1 = inlined_call_operand.vmem [shape: f32[3,16,128], index: 1, kind: input, shape index: {}]   ;;  %s162_s2 = inlined_call_operand.vmem [shape: f32[16,128], index: 2, kind: output, shape index: {}]  }
   0x1   :  { %102 = vset.pattern.permute.xlu1 %v111_v0  ;;  %101 = vset.pattern.permute.xlu0 %v112_v1  ;;  %v11_v2 = vld [vmem:[%s160_s0] sm:$0xff]  ;;  %v12_v3 = vld [vmem:[%s160_s0 + $0x8] sm:$0xff]  ;;  %v93_v8 = vld [vmem:[%s161_s1 + $0x10] sm:$0xff] }
   0x2   :  { %31 = vperm.xlu1 %102, %v11_v2   ;;  %17 = vperm.xlu0 %101, %v11_v2   ;;  %v13_v9 = vld [vmem:[%s161_s1] sm:$0xff]  ;;  %v94_v10 = vld [vmem:[%s161_s1 + $0x18] sm:$0xff]  ;;  %v14_v11 = vld [vmem:[%s161_s1 + $0x8] sm:$0xff] }
   0x3   :  { %v96_v18 = vld [vmem:[%s161_s1 + $0x28] sm:$0xff]  ;;  %v95_v19 = vld [vmem:[%s161_s1 + $0x20] sm:$0xff] }
   0x6   :  { %35 = vperm.xlu1 %102, %v12_v3   ;;  %22 = vperm.xlu0 %101, %v12_v3  }
   0xa   :  { %104 = vset.pattern.permute.xlu1 %v113_v4  ;;  %103 = vset.pattern.permute.xlu0 %v113_v4 }
   0xb   :  { %48 = vperm.xlu1 %104, %v12_v3   ;;  %44 = vperm.xlu0 %103, %v11_v2  }
   0xf   :  { %105 = vset.pattern.permute.xlu1 %v114_v5  ;;  %106 = vset.pattern.permute.xlu0 %v114_v5 }
  0x10   :  { %78 = vperm.xlu1 %105, %v11_v2   ;;  %82 = vperm.xlu0 %106, %v12_v3  }
  0x81   :  { %v32_v6 = vpop.permute.xlu1 %31  ;;  %v18_v7 = vpop.permute.xlu0 %17 }
  0x82   :  { %v38_v12 = vsub.f32 %v32_v6, %v93_v8  ;;  %v25_v13 = vsub.f32 %v18_v7, %v13_v9 }
  0x84   :  { %v55_v20 = vmul.f32 %v38_v12, %v38_v12  ;;  %v53_v21 = vmul.f32 %v25_v13, %v25_v13 }
  0x85   :  { %v36_v14 = vpop.permute.xlu1 %35  ;;  %v23_v15 = vpop.permute.xlu0 %22 }
  0x86   :  { %v39_v16 = vsub.f32 %v36_v14, %v94_v10  ;;  %v26_v17 = vsub.f32 %v23_v15, %v14_v11  ;;  %v57_v28 = vadd.f32 %v55_v20, %v53_v21 }
  0x88   :  { %v56_v22 = vmul.f32 %v39_v16, %v39_v16  ;;  %v54_v23 = vmul.f32 %v26_v17, %v26_v17 }
  0x8a   :  { %v49_v24 = vpop.permute.xlu1 %48  ;;  %v45_v25 = vpop.permute.xlu0 %44  ;;  %v58_v29 = vadd.f32 %v56_v22, %v54_v23 }
  0x8b   :  { %v52_v26 = vsub.f32 %v49_v24, %v96_v18  ;;  %v51_v27 = vsub.f32 %v45_v25, %v95_v19 }
  0x8d   :  { %v60_v30 = vmul.f32 %v52_v26, %v52_v26  ;;  %v59_v31 = vmul.f32 %v51_v27, %v51_v27 }
  0x8f   :  { %v62_v32 = vadd.f32 %v60_v30, %v58_v29  ;;  %v61_v33 = vadd.f32 %v59_v31, %v57_v28  ;;  %v79_v37 = vpop.permute.xlu1 %78  ;;  %v83_v42 = vpop.permute.xlu0 %82 }
  0x91   :  { %107 = vrsqrt.f32 %v61_v33  ;;  %vm65_vm0 = vcmp.eq.f32.partialorder %v61_v33, inf  ;;  %v68_v38 = vand.u32 2147483648, %v61_v33  ;;  %vm67_vm1 = vcmp.eq.f32.partialorder %v61_v33, 0.0 }
  0x92   :  { %109 = vrsqrt.f32 %v62_v32  ;;  %vm72_vm2 = vcmp.eq.f32.partialorder %v62_v32, inf  ;;  %v75_v41 = vand.u32 2147483648, %v62_v32  ;;  %vm74_vm3 = vcmp.eq.f32.partialorder %v62_v32, 0.0 }
  0x9b   :  { %v108_v34 = vpop.eup %107 }
  0x9c   :  { %v110_v35 = vpop.eup %109  ;;  %v64_v36 = vmul.f32 %v108_v34, %v61_v33 }
  0x9d   :  { %v71_v39 = vmul.f32 %v110_v35, %v62_v32 }
  0x9e   :  { %v66_v40 = vsel %vm65_vm0, %v61_v33, %v64_v36 }
  0x9f   :  { %v69_v43 = vsel %vm67_vm1, %v68_v38, %v66_v40  ;;  %v73_v44 = vsel %vm72_vm2, %v62_v32, %v71_v39 }
  0xa0   :  { %v85_v45 = vadd.f32 %v79_v37, %v69_v43  ;;  %v76_v46 = vsel %vm74_vm3, %v75_v41, %v73_v44 }
  0xa1   :  { %v86_v47 = vadd.f32 %v83_v42, %v76_v46 }
  0xa2   :  { %87 = vst [vmem:[%s162_s2] sm:$0xff] %v85_v45 }
  0xa3   :  { %88 = vst [vmem:[%s162_s2 + $0x8] sm:$0xff] %v86_v47 }

</bundles_post_ra>
